<compile_context>
chip_gen: v6e
topology: v6e:2x2x1
jax: 0.10.0
libtpu: 0.0.40
codegen_flags: <defaults>
</compile_context>

<pallas_src>
import functools

import numpy as np

import jax
import jax.numpy as jnp
from jax import lax
from jax.experimental import pallas as pl
from jax.experimental.pallas import tpu as pltpu


def _lstm_tagger_kernel(x2_ref,       # (T, 2E)  bf16, row t = [emb(t) | emb(T-1-t)]
                        wih_ref,      # (2E, 8H) bf16, packed input->gate weights (both dirs)
                        whh_ref,      # (2H, 8H) bf16, block-diagonal recurrent weights
                        b_ref,        # (1, 8H)  f32, packed biases (b_ih + b_hh, both dirs)
                        wtag_ref,     # (4H, L)  f32, packed hidden2tag (L = tagset padded to 128)
                        btag_ref,     # (1, L)   f32, tag bias, padded lanes = -1e30
                        out_ref,      # (T, L)   f32, lane-dense log_softmax output
                        xg,           # scratch (T, 8H) f32, input gate pre-activations
                        hbuf,         # scratch (T, 4H) f32, [h_f(r), h_b(T-1-r), h_f(T-1-r), h_b(r)]
                        *, hidden_dim):
    H = hidden_dim
    H2, H4, H6, H8 = 2 * H, 4 * H, 6 * H, 8 * H
    T = x2_ref.shape[0]

    # Fused input projection for BOTH directions and BOTH time orders:
    # one (T, 2E) @ (2E, 8H) MXU matmul (time reversal pre-folded into x2 / w_ih packing).
    xg[...] = (jnp.dot(x2_ref[...], wih_ref[...],
                       preferred_element_type=jnp.float32) + b_ref[...])

    # Loop-invariant recurrent weight: load once, lives in vregs across the unrolled loop.
    whh = whh_ref[...]                            # (2H, 8H) bf16, block diagonal

    # Gate/lane layout (each block H wide, gate-major / direction-minor):
    #   [i_f i_b f_f f_b g_f g_b o_f o_b]
    # The g-gate columns carry a pre-folded x2 scale so tanh can be recovered from sigmoid.
    lane = lax.broadcasted_iota(jnp.int32, (1, H8), 1)
    g_lane = (lane >= H4) & (lane < H6)

    def step(t, carry):
        h, c = carry                              # (1, 2H) f32 each, layout [fwd | bwd]
        gates = xg[pl.ds(t, 1), :] + jnp.dot(h.astype(whh.dtype), whh,
                                             preferred_element_type=jnp.float32)  # (1, 8H)

        # Single full-width EUP push; tanh lanes recovered as 2*sigmoid(2x) - 1 on the VPU.
        s = jax.nn.sigmoid(gates)
        act = jnp.where(g_lane, 2.0 * s - 1.0, s)

        i_g = act[:, 0:H2]
        f_g = act[:, H2:H4]
        g_g = act[:, H4:H6]
        o_g = act[:, H6:H8]

        c_new = f_g * c + i_g * g_g
        h_new = o_g * jnp.tanh(c_new)

        tt = T - 1 - t
        hbuf[pl.ds(t, 1), 0:H2] = h_new           # time order  -> forward-aligned half
        hbuf[pl.ds(tt, 1), H2:H4] = h_new         # reversed    -> backward-aligned half
        return h_new, c_new

    h0 = jnp.zeros((1, H2), jnp.float32)
    c0 = jnp.zeros((1, H2), jnp.float32)
    lax.fori_loop(0, T, step, (h0, c0), unroll=True)

    # hidden2tag + log_softmax: one (T, 4H=128) @ (4H, L) dot on a lane-dense scratch.
    tag = (jnp.dot(hbuf[...], wtag_ref[...], preferred_element_type=jnp.float32)
           + btag_ref[...])
    m = jnp.max(tag, axis=1, keepdims=True)       # padded lanes hold -1e30 -> never the max
    lse = m + jnp.log(jnp.sum(jnp.exp(tag - m), axis=1, keepdims=True))
    out_ref[...] = tag - lse


def init_params(key, vocab_size, embedding_dim, hidden_dim, tagset_size):
    """Deterministic synthetic parameters matching LSTMTagger.__init__ shapes (PyTorch layout)."""
    H = hidden_dim
    ks = jax.random.split(key, 11)
    s = 1.0 / jnp.sqrt(jnp.float32(H))

    def u(k, shape):
        return jax.random.uniform(k, shape, jnp.float32, -s, s)

    return dict(
        embedding=jax.random.normal(ks[0], (vocab_size, embedding_dim), jnp.float32),
        # forward-direction LSTM weights (PyTorch layout, gate order i, f, g, o)
        w_ih_f=u(ks[1], (4 * H, embedding_dim)),
        w_hh_f=u(ks[2], (4 * H, H)),
        b_f=u(ks[3], (1, 4 * H)) + u(ks[4], (1, 4 * H)),   # b_ih + b_hh
        # reverse-direction LSTM weights
        w_ih_b=u(ks[5], (4 * H, embedding_dim)),
        w_hh_b=u(ks[6], (4 * H, H)),
        b_b=u(ks[7], (1, 4 * H)) + u(ks[8], (1, 4 * H)),
        # hidden2tag linear
        w_tag=u(ks[9], (tagset_size, 2 * H)),
        b_tag=u(ks[10], (1, tagset_size)),
    )


def pack_params(params, hidden_dim):
    """One-time repack of PyTorch-layout weights into the kernel's fused layout.

    Gate lane layout (each block H wide): [i_f i_b f_f f_b g_f g_b o_f o_b].
    The g-gate (tanh) columns are pre-scaled by 2 so tanh(x) = 2*sigmoid(2x) - 1 can be computed
    from a single sigmoid pass in-kernel.  The input->gate matrix is (2E, 8H): top E rows hold
    forward weights (fed by emb(t)), bottom E rows hold backward weights (fed by emb(T-1-t)).
    """
    H = hidden_dim
    E = params["w_ih_f"].shape[1]
    wihf, wihb = params["w_ih_f"], params["w_ih_b"]     # (4H, E)
    whhf, whhb = params["w_hh_f"], params["w_hh_b"]     # (4H, H)
    bf, bb = params["b_f"], params["b_b"]               # (1, 4H)
    tagset = params["w_tag"].shape[0]

    w_ih_p = jnp.zeros((2 * E, 8 * H), jnp.float32)
    w_hh_p = jnp.zeros((2 * H, 8 * H), jnp.float32)
    b_blocks = []
    for g in range(4):                                   # PyTorch gate order i, f, g, o
        scale = 2.0 if g == 2 else 1.0                   # x2 fold for the tanh (g) gate
        rows = slice(g * H, (g + 1) * H)
        cf, cb = (2 * g) * H, (2 * g + 1) * H
        w_ih_p = w_ih_p.at[0:E, cf:cf + H].set(scale * wihf[rows, :].T)
        w_ih_p = w_ih_p.at[E:2 * E, cb:cb + H].set(scale * wihb[rows, :].T)
        w_hh_p = w_hh_p.at[0:H, cf:cf + H].set(scale * whhf[rows, :].T)      # fwd carry -> fwd gates
        w_hh_p = w_hh_p.at[H:2 * H, cb:cb + H].set(scale * whhb[rows, :].T)  # bwd carry -> bwd gates
        b_blocks += [scale * bf[:, rows], scale * bb[:, rows]]
    b_p = jnp.concatenate(b_blocks, axis=1)              # (1, 8H)

    # hidden2tag packed against the (T, 4H) hidden buffer:
    #   hbuf row r = [h_f(r) | h_b(T-1-r) | h_f(T-1-r) | h_b(r)]
    # -> rows 0:H multiply h_f(r), rows 3H:4H multiply h_b(r), middle rows are zero.
    # Lane-pad the tag dimension to a multiple of 128; padded bias lanes get -1e30 so they never
    # affect the log_softmax max/sum.
    tag_lanes = ((tagset + 127) // 128) * 128
    wt = params["w_tag"]                                 # (tagset, 2H)
    w_tag4 = jnp.zeros((4 * H, tag_lanes), jnp.float32)
    w_tag4 = w_tag4.at[0:H, 0:tagset].set(wt[:, 0:H].T)
    w_tag4 = w_tag4.at[3 * H:4 * H, 0:tagset].set(wt[:, H:2 * H].T)
    b_tag4 = jnp.full((1, tag_lanes), -1e30, jnp.float32)
    b_tag4 = b_tag4.at[:, 0:tagset].set(params["b_tag"][0])

    return dict(
        embedding=params["embedding"],
        w_ih_p=w_ih_p.astype(jnp.bfloat16),              # bf16 MXU operands (f32 accumulation)
        w_hh_p=w_hh_p.astype(jnp.bfloat16),
        b_p=b_p,
        w_tag4=w_tag4, b_tag4=b_tag4,
    )


def lstm_tagger_forward(token_ids, packed, hidden_dim, tagset_size):
    # Glue: embedding lookup (gather) and the [x | reverse(x)] fold stay in plain JAX.
    embeds = packed["embedding"][token_ids]                       # (T, E)
    x2 = jnp.concatenate([embeds, embeds[::-1]], axis=1)          # (T, 2E)
    x2 = x2.astype(jnp.bfloat16)
    T = embeds.shape[0]
    H = hidden_dim
    tag_lanes = packed["b_tag4"].shape[1]

    kernel = functools.partial(_lstm_tagger_kernel, hidden_dim=H)
    out = pl.pallas_call(
        kernel,
        out_shape=jax.ShapeDtypeStruct((T, tag_lanes), jnp.float32),
        scratch_shapes=[
            pltpu.VMEM((T, 8 * H), jnp.float32),   # xg: fused input gate pre-activations
            pltpu.VMEM((T, 4 * H), jnp.float32),   # hbuf: lane-dense 4H hidden buffer
        ],
    )(x2, packed["w_ih_p"], packed["w_hh_p"], packed["b_p"],
      packed["w_tag4"], packed["b_tag4"])
    return out[:, :tagset_size]


def _reference_forward(token_ids, params, hidden_dim):
    """float64 numpy reference of LSTMTagger.forward (PyTorch semantics) for a self-check."""
    H = hidden_dim
    p = {k: np.asarray(v, dtype=np.float64) for k, v in params.items()}
    x = p["embedding"][np.asarray(token_ids)]

    def sigmoid(z):
        return 1.0 / (1.0 + np.exp(-z))

    def run(wih, whh, b, xs):
        h = np.zeros(H); c = np.zeros(H); outs = []
        for t in range(xs.shape[0]):
            gates = wih @ xs[t] + whh @ h + b[0]
            i = sigmoid(gates[0:H]); f = sigmoid(gates[H:2 * H])
            g = np.tanh(gates[2 * H:3 * H]); o = sigmoid(gates[3 * H:4 * H])
            c = f * c + i * g
            h = o * np.tanh(c)
            outs.append(h)
        return np.stack(outs)

    hf = run(p["w_ih_f"], p["w_hh_f"], p["b_f"], x)
    hb = run(p["w_ih_b"], p["w_hh_b"], p["b_b"], x[::-1])[::-1]
    tag = np.concatenate([hf, hb], axis=1) @ p["w_tag"].T + p["b_tag"][0]
    m = tag.max(axis=1, keepdims=True)
    return tag - (m + np.log(np.exp(tag - m).sum(axis=1, keepdims=True)))


if __name__ == "__main__":
    EMBEDDING_DIM = 16
    HIDDEN_DIM = 32
    VOCAB_SIZE = 50
    TAGSET_SIZE = 10
    SEQ_LEN = 8

    key = jax.random.PRNGKey(0)
    k_params, k_tokens = jax.random.split(key)

    params = init_params(k_params, VOCAB_SIZE, EMBEDDING_DIM, HIDDEN_DIM, TAGSET_SIZE)
    packed = pack_params(params, HIDDEN_DIM)             # one-time weight repack (not per call)
    token_ids = jax.random.randint(k_tokens, (SEQ_LEN,), 0, VOCAB_SIZE)

    fwd = jax.jit(functools.partial(lstm_tagger_forward,
                                    hidden_dim=HIDDEN_DIM, tagset_size=TAGSET_SIZE))
    tag_scores = fwd(token_ids, packed)
    jax.block_until_ready(tag_scores)

    assert tag_scores.shape == (SEQ_LEN, TAGSET_SIZE)
    ref = _reference_forward(token_ids, params, HIDDEN_DIM)
    # Tolerance covers bf16 MXU operands + EUP approximations vs a float64 reference; any
    # gate-packing / time-reversal / tag-packing bug produces O(0.3+) errors and is still caught.
    assert np.allclose(np.asarray(tag_scores), ref, atol=1e-1), (
        float(np.max(np.abs(np.asarray(tag_scores) - ref))))
    print("KERNEL_OK")
</pallas_src>

<mosaic_0001>
module attributes {stable_mosaic.version = 11 : i64} {
  func.func @_lstm_tagger_kernel(%arg0: memref<8x32xbf16, #tpu.memory_space<vmem>>, %arg1: memref<32x256xbf16, #tpu.memory_space<vmem>>, %arg2: memref<64x256xbf16, #tpu.memory_space<vmem>>, %arg3: memref<1x256xf32, #tpu.memory_space<vmem>>, %arg4: memref<128x128xf32, #tpu.memory_space<vmem>>, %arg5: memref<1x128xf32, #tpu.memory_space<vmem>>, %arg6: memref<8x128xf32, #tpu.memory_space<vmem>>, %arg7: memref<8x256xf32, #tpu.memory_space<vmem>>, %arg8: memref<8x128xf32, #tpu.memory_space<vmem>>) attributes {dimension_semantics = [], scalar_prefetch = 0 : i64, scratch_operands = 2 : i64, tpu.core_type = #tpu.core_type<tc>} {
    %c0 = arith.constant 0 : index
    %c0_0 = arith.constant 0 : index
    %0 = vector.load %arg0[%c0, %c0_0] : memref<8x32xbf16, #tpu.memory_space<vmem>>, vector<8x32xbf16>
    %c0_1 = arith.constant 0 : index
    %c0_2 = arith.constant 0 : index
    %1 = vector.load %arg1[%c0_1, %c0_2] : memref<32x256xbf16, #tpu.memory_space<vmem>>, vector<32x256xbf16>
    %cst = arith.constant dense<0.000000e+00> : vector<8x256xf32>
    %2 = tpu.matmul %0, %1, %cst {dimension_numbers = #tpu.dot_dimension_numbers<[1], [0], [0], [1], [0, 0, 1, 1], [], []>} : vector<8x32xbf16>, vector<32x256xbf16>, vector<8x256xf32> -> vector<8x256xf32>
    %c0_3 = arith.constant 0 : index
    %c0_4 = arith.constant 0 : index
    %3 = vector.load %arg3[%c0_3, %c0_4] : memref<1x256xf32, #tpu.memory_space<vmem>>, vector<1x256xf32>
    %4 = vector.broadcast %3 : vector<1x256xf32> to vector<8x256xf32>
    %5 = arith.addf %2, %4 : vector<8x256xf32>
    %c0_5 = arith.constant 0 : index
    %c0_6 = arith.constant 0 : index
    %6 = vector.load %arg7[%c0_5, %c0_6] : memref<8x256xf32, #tpu.memory_space<vmem>>, vector<8x256xf32>
    tpu.vector_store %arg7[%c0_5, %c0_6], %5 {strides = array<i32>} : memref<8x256xf32, #tpu.memory_space<vmem>>, vector<8x256xf32>,
    %c0_7 = arith.constant 0 : index
    %c0_8 = arith.constant 0 : index
    %7 = vector.load %arg2[%c0_7, %c0_8] : memref<64x256xbf16, #tpu.memory_space<vmem>>, vector<64x256xbf16>
    %8 = tpu.iota {dimensions = array<i32: 1>} : vector<1x256xi32>
    %c128_i32 = arith.constant 128 : i32
    %9 = vector.broadcast %c128_i32 : i32 to vector<1x256xi32>
    %10 = arith.cmpi sge, %8, %9 : vector<1x256xi32>
    %c192_i32 = arith.constant 192 : i32
    %11 = vector.broadcast %c192_i32 : i32 to vector<1x256xi32>
    %12 = arith.cmpi slt, %8, %11 : vector<1x256xi32>
    %13 = arith.andi %10, %12 : vector<1x256xi1>
    %cst_9 = arith.constant 0.000000e+00 : f32
    %14 = vector.broadcast %cst_9 : f32 to vector<1x64xf32>
    %cst_10 = arith.constant 0.000000e+00 : f32
    %15 = vector.broadcast %cst_10 : f32 to vector<1x64xf32>
    %c0_i32 = arith.constant 0 : i32
    %16 = arith.index_cast %c0_i32 : i32 to index
    %c0_11 = arith.constant 0 : index
    %17 = vector.load %arg7[%16, %c0_11] : memref<8x256xf32, #tpu.memory_space<vmem>>, vector<1x256xf32>
    %18 = arith.truncf %14 : vector<1x64xf32> to vector<1x64xbf16>
    %cst_12 = arith.constant dense<0.000000e+00> : vector<1x256xf32>
    %19 = tpu.matmul %18, %7, %cst_12 {dimension_numbers = #tpu.dot_dimension_numbers<[1], [0], [0], [1], [0, 0, 1, 1], [], []>} : vector<1x64xbf16>, vector<64x256xbf16>, vector<1x256xf32> -> vector<1x256xf32>
    %20 = arith.addf %17, %19 : vector<1x256xf32>
    %21 = arith.negf %20 : vector<1x256xf32>
    %22 = math.exp %21 : vector<1x256xf32>
    %cst_13 = arith.constant 1.000000e+00 : f32
    %23 = vector.broadcast %cst_13 : f32 to vector<1x256xf32>
    %24 = arith.addf %23, %22 : vector<1x256xf32>
    %25 = arith.divf %23, %24 : vector<1x256xf32>
    %cst_14 = arith.constant 2.000000e+00 : f32
    %26 = vector.broadcast %cst_14 : f32 to vector<1x256xf32>
    %27 = arith.mulf %26, %25 : vector<1x256xf32>
    %cst_15 = arith.constant 1.000000e+00 : f32
    %28 = vector.broadcast %cst_15 : f32 to vector<1x256xf32>
    %29 = arith.subf %27, %28 : vector<1x256xf32>
    %30 = arith.select %13, %29, %25 : vector<1x256xi1>, vector<1x256xf32>
    %31 = vector.extract_strided_slice %30 {offsets = [0, 0], sizes = [1, 64], strides = [1, 1]} : vector<1x256xf32> to vector<1x64xf32>
    %32 = vector.extract_strided_slice %30 {offsets = [0, 64], sizes = [1, 64], strides = [1, 1]} : vector<1x256xf32> to vector<1x64xf32>
    %33 = vector.extract_strided_slice %30 {offsets = [0, 128], sizes = [1, 64], strides = [1, 1]} : vector<1x256xf32> to vector<1x64xf32>
    %34 = vector.extract_strided_slice %30 {offsets = [0, 192], sizes = [1, 64], strides = [1, 1]} : vector<1x256xf32> to vector<1x64xf32>
    %35 = arith.mulf %32, %15 : vector<1x64xf32>
    %36 = arith.mulf %31, %33 : vector<1x64xf32>
    %37 = arith.addf %35, %36 : vector<1x64xf32>
    %38 = math.tanh %37 : vector<1x64xf32>
    %39 = arith.mulf %34, %38 : vector<1x64xf32>
    %c7_i32 = arith.constant 7 : i32
    %40 = arith.subi %c7_i32, %c0_i32 : i32
    %41 = arith.index_cast %c0_i32 : i32 to index
    %c0_16 = arith.constant 0 : index
    %42 = vector.load %arg8[%41, %c0_16] : memref<8x128xf32, #tpu.memory_space<vmem>>, vector<1x64xf32>
    tpu.vector_store %arg8[%41, %c0_16], %39 {strides = array<i32>} : memref<8x128xf32, #tpu.memory_space<vmem>>, vector<1x64xf32>,
    %43 = arith.index_cast %40 : i32 to index
    %c64 = arith.constant 64 : index
    %44 = vector.load %arg8[%43, %c64] : memref<8x128xf32, #tpu.memory_space<vmem>>, vector<1x64xf32>
    tpu.vector_store %arg8[%43, %c64], %39 {strides = array<i32>} : memref<8x128xf32, #tpu.memory_space<vmem>>, vector<1x64xf32>,
    %c1_i32 = arith.constant 1 : i32
    %45 = arith.index_cast %c1_i32 : i32 to index
    %c0_17 = arith.constant 0 : index
    %46 = vector.load %arg7[%45, %c0_17] : memref<8x256xf32, #tpu.memory_space<vmem>>, vector<1x256xf32>
    %47 = arith.truncf %39 : vector<1x64xf32> to vector<1x64xbf16>
    %cst_18 = arith.constant dense<0.000000e+00> : vector<1x256xf32>
    %48 = tpu.matmul %47, %7, %cst_18 {dimension_numbers = #tpu.dot_dimension_numbers<[1], [0], [0], [1], [0, 0, 1, 1], [], []>} : vector<1x64xbf16>, vector<64x256xbf16>, vector<1x256xf32> -> vector<1x256xf32>
    %49 = arith.addf %46, %48 : vector<1x256xf32>
    %50 = arith.negf %49 : vector<1x256xf32>
    %51 = math.exp %50 : vector<1x256xf32>
    %cst_19 = arith.constant 1.000000e+00 : f32
    %52 = vector.broadcast %cst_19 : f32 to vector<1x256xf32>
    %53 = arith.addf %52, %51 : vector<1x256xf32>
    %54 = arith.divf %52, %53 : vector<1x256xf32>
    %cst_20 = arith.constant 2.000000e+00 : f32
    %55 = vector.broadcast %cst_20 : f32 to vector<1x256xf32>
    %56 = arith.mulf %55, %54 : vector<1x256xf32>
    %cst_21 = arith.constant 1.000000e+00 : f32
    %57 = vector.broadcast %cst_21 : f32 to vector<1x256xf32>
    %58 = arith.subf %56, %57 : vector<1x256xf32>
    %59 = arith.select %13, %58, %54 : vector<1x256xi1>, vector<1x256xf32>
    %60 = vector.extract_strided_slice %59 {offsets = [0, 0], sizes = [1, 64], strides = [1, 1]} : vector<1x256xf32> to vector<1x64xf32>
    %61 = vector.extract_strided_slice %59 {offsets = [0, 64], sizes = [1, 64], strides = [1, 1]} : vector<1x256xf32> to vector<1x64xf32>
    %62 = vector.extract_strided_slice %59 {offsets = [0, 128], sizes = [1, 64], strides = [1, 1]} : vector<1x256xf32> to vector<1x64xf32>
    %63 = vector.extract_strided_slice %59 {offsets = [0, 192], sizes = [1, 64], strides = [1, 1]} : vector<1x256xf32> to vector<1x64xf32>
    %64 = arith.mulf %61, %37 : vector<1x64xf32>
    %65 = arith.mulf %60, %62 : vector<1x64xf32>
    %66 = arith.addf %64, %65 : vector<1x64xf32>
    %67 = math.tanh %66 : vector<1x64xf32>
    %68 = arith.mulf %63, %67 : vector<1x64xf32>
    %c7_i32_22 = arith.constant 7 : i32
    %69 = arith.subi %c7_i32_22, %c1_i32 : i32
    %70 = arith.index_cast %c1_i32 : i32 to index
    %c0_23 = arith.constant 0 : index
    %71 = vector.load %arg8[%70, %c0_23] : memref<8x128xf32, #tpu.memory_space<vmem>>, vector<1x64xf32>
    tpu.vector_store %arg8[%70, %c0_23], %68 {strides = array<i32>} : memref<8x128xf32, #tpu.memory_space<vmem>>, vector<1x64xf32>,
    %72 = arith.index_cast %69 : i32 to index
    %c64_24 = arith.constant 64 : index
    %73 = vector.load %arg8[%72, %c64_24] : memref<8x128xf32, #tpu.memory_space<vmem>>, vector<1x64xf32>
    tpu.vector_store %arg8[%72, %c64_24], %68 {strides = array<i32>} : memref<8x128xf32, #tpu.memory_space<vmem>>, vector<1x64xf32>,
    %c2_i32 = arith.constant 2 : i32
    %74 = arith.index_cast %c2_i32 : i32 to index
    %c0_25 = arith.constant 0 : index
    %75 = vector.load %arg7[%74, %c0_25] : memref<8x256xf32, #tpu.memory_space<vmem>>, vector<1x256xf32>
    %76 = arith.truncf %68 : vector<1x64xf32> to vector<1x64xbf16>
    %cst_26 = arith.constant dense<0.000000e+00> : vector<1x256xf32>
    %77 = tpu.matmul %76, %7, %cst_26 {dimension_numbers = #tpu.dot_dimension_numbers<[1], [0], [0], [1], [0, 0, 1, 1], [], []>} : vector<1x64xbf16>, vector<64x256xbf16>, vector<1x256xf32> -> vector<1x256xf32>
    %78 = arith.addf %75, %77 : vector<1x256xf32>
    %79 = arith.negf %78 : vector<1x256xf32>
    %80 = math.exp %79 : vector<1x256xf32>
    %cst_27 = arith.constant 1.000000e+00 : f32
    %81 = vector.broadcast %cst_27 : f32 to vector<1x256xf32>
    %82 = arith.addf %81, %80 : vector<1x256xf32>
    %83 = arith.divf %81, %82 : vector<1x256xf32>
    %cst_28 = arith.constant 2.000000e+00 : f32
    %84 = vector.broadcast %cst_28 : f32 to vector<1x256xf32>
    %85 = arith.mulf %84, %83 : vector<1x256xf32>
    %cst_29 = arith.constant 1.000000e+00 : f32
    %86 = vector.broadcast %cst_29 : f32 to vector<1x256xf32>
    %87 = arith.subf %85, %86 : vector<1x256xf32>
    %88 = arith.select %13, %87, %83 : vector<1x256xi1>, vector<1x256xf32>
    %89 = vector.extract_strided_slice %88 {offsets = [0, 0], sizes = [1, 64], strides = [1, 1]} : vector<1x256xf32> to vector<1x64xf32>
    %90 = vector.extract_strided_slice %88 {offsets = [0, 64], sizes = [1, 64], strides = [1, 1]} : vector<1x256xf32> to vector<1x64xf32>
    %91 = vector.extract_strided_slice %88 {offsets = [0, 128], sizes = [1, 64], strides = [1, 1]} : vector<1x256xf32> to vector<1x64xf32>
    %92 = vector.extract_strided_slice %88 {offsets = [0, 192], sizes = [1, 64], strides = [1, 1]} : vector<1x256xf32> to vector<1x64xf32>
    %93 = arith.mulf %90, %66 : vector<1x64xf32>
    %94 = arith.mulf %89, %91 : vector<1x64xf32>
    %95 = arith.addf %93, %94 : vector<1x64xf32>
    %96 = math.tanh %95 : vector<1x64xf32>
    %97 = arith.mulf %92, %96 : vector<1x64xf32>
    %c7_i32_30 = arith.constant 7 : i32
    %98 = arith.subi %c7_i32_30, %c2_i32 : i32
    %99 = arith.index_cast %c2_i32 : i32 to index
    %c0_31 = arith.constant 0 : index
    %100 = vector.load %arg8[%99, %c0_31] : memref<8x128xf32, #tpu.memory_space<vmem>>, vector<1x64xf32>
    tpu.vector_store %arg8[%99, %c0_31], %97 {strides = array<i32>} : memref<8x128xf32, #tpu.memory_space<vmem>>, vector<1x64xf32>,
    %101 = arith.index_cast %98 : i32 to index
    %c64_32 = arith.constant 64 : index
    %102 = vector.load %arg8[%101, %c64_32] : memref<8x128xf32, #tpu.memory_space<vmem>>, vector<1x64xf32>
    tpu.vector_store %arg8[%101, %c64_32], %97 {strides = array<i32>} : memref<8x128xf32, #tpu.memory_space<vmem>>, vector<1x64xf32>,
    %c3_i32 = arith.constant 3 : i32
    %103 = arith.index_cast %c3_i32 : i32 to index
    %c0_33 = arith.constant 0 : index
    %104 = vector.load %arg7[%103, %c0_33] : memref<8x256xf32, #tpu.memory_space<vmem>>, vector<1x256xf32>
    %105 = arith.truncf %97 : vector<1x64xf32> to vector<1x64xbf16>
    %cst_34 = arith.constant dense<0.000000e+00> : vector<1x256xf32>
    %106 = tpu.matmul %105, %7, %cst_34 {dimension_numbers = #tpu.dot_dimension_numbers<[1], [0], [0], [1], [0, 0, 1, 1], [], []>} : vector<1x64xbf16>, vector<64x256xbf16>, vector<1x256xf32> -> vector<1x256xf32>
    %107 = arith.addf %104, %106 : vector<1x256xf32>
    %108 = arith.negf %107 : vector<1x256xf32>
    %109 = math.exp %108 : vector<1x256xf32>
    %cst_35 = arith.constant 1.000000e+00 : f32
    %110 = vector.broadcast %cst_35 : f32 to vector<1x256xf32>
    %111 = arith.addf %110, %109 : vector<1x256xf32>
    %112 = arith.divf %110, %111 : vector<1x256xf32>
    %cst_36 = arith.constant 2.000000e+00 : f32
    %113 = vector.broadcast %cst_36 : f32 to vector<1x256xf32>
    %114 = arith.mulf %113, %112 : vector<1x256xf32>
    %cst_37 = arith.constant 1.000000e+00 : f32
    %115 = vector.broadcast %cst_37 : f32 to vector<1x256xf32>
    %116 = arith.subf %114, %115 : vector<1x256xf32>
    %117 = arith.select %13, %116, %112 : vector<1x256xi1>, vector<1x256xf32>
    %118 = vector.extract_strided_slice %117 {offsets = [0, 0], sizes = [1, 64], strides = [1, 1]} : vector<1x256xf32> to vector<1x64xf32>
    %119 = vector.extract_strided_slice %117 {offsets = [0, 64], sizes = [1, 64], strides = [1, 1]} : vector<1x256xf32> to vector<1x64xf32>
    %120 = vector.extract_strided_slice %117 {offsets = [0, 128], sizes = [1, 64], strides = [1, 1]} : vector<1x256xf32> to vector<1x64xf32>
    %121 = vector.extract_strided_slice %117 {offsets = [0, 192], sizes = [1, 64], strides = [1, 1]} : vector<1x256xf32> to vector<1x64xf32>
    %122 = arith.mulf %119, %95 : vector<1x64xf32>
    %123 = arith.mulf %118, %120 : vector<1x64xf32>
    %124 = arith.addf %122, %123 : vector<1x64xf32>
    %125 = math.tanh %124 : vector<1x64xf32>
    %126 = arith.mulf %121, %125 : vector<1x64xf32>
    %c7_i32_38 = arith.constant 7 : i32
    %127 = arith.subi %c7_i32_38, %c3_i32 : i32
    %128 = arith.index_cast %c3_i32 : i32 to index
    %c0_39 = arith.constant 0 : index
    %129 = vector.load %arg8[%128, %c0_39] : memref<8x128xf32, #tpu.memory_space<vmem>>, vector<1x64xf32>
    tpu.vector_store %arg8[%128, %c0_39], %126 {strides = array<i32>} : memref<8x128xf32, #tpu.memory_space<vmem>>, vector<1x64xf32>,
    %130 = arith.index_cast %127 : i32 to index
    %c64_40 = arith.constant 64 : index
    %131 = vector.load %arg8[%130, %c64_40] : memref<8x128xf32, #tpu.memory_space<vmem>>, vector<1x64xf32>
    tpu.vector_store %arg8[%130, %c64_40], %126 {strides = array<i32>} : memref<8x128xf32, #tpu.memory_space<vmem>>, vector<1x64xf32>,
    %c4_i32 = arith.constant 4 : i32
    %132 = arith.index_cast %c4_i32 : i32 to index
    %c0_41 = arith.constant 0 : index
    %133 = vector.load %arg7[%132, %c0_41] : memref<8x256xf32, #tpu.memory_space<vmem>>, vector<1x256xf32>
    %134 = arith.truncf %126 : vector<1x64xf32> to vector<1x64xbf16>
    %cst_42 = arith.constant dense<0.000000e+00> : vector<1x256xf32>
    %135 = tpu.matmul %134, %7, %cst_42 {dimension_numbers = #tpu.dot_dimension_numbers<[1], [0], [0], [1], [0, 0, 1, 1], [], []>} : vector<1x64xbf16>, vector<64x256xbf16>, vector<1x256xf32> -> vector<1x256xf32>
    %136 = arith.addf %133, %135 : vector<1x256xf32>
    %137 = arith.negf %136 : vector<1x256xf32>
    %138 = math.exp %137 : vector<1x256xf32>
    %cst_43 = arith.constant 1.000000e+00 : f32
    %139 = vector.broadcast %cst_43 : f32 to vector<1x256xf32>
    %140 = arith.addf %139, %138 : vector<1x256xf32>
    %141 = arith.divf %139, %140 : vector<1x256xf32>
    %cst_44 = arith.constant 2.000000e+00 : f32
    %142 = vector.broadcast %cst_44 : f32 to vector<1x256xf32>
    %143 = arith.mulf %142, %141 : vector<1x256xf32>
    %cst_45 = arith.constant 1.000000e+00 : f32
    %144 = vector.broadcast %cst_45 : f32 to vector<1x256xf32>
    %145 = arith.subf %143, %144 : vector<1x256xf32>
    %146 = arith.select %13, %145, %141 : vector<1x256xi1>, vector<1x256xf32>
    %147 = vector.extract_strided_slice %146 {offsets = [0, 0], sizes = [1, 64], strides = [1, 1]} : vector<1x256xf32> to vector<1x64xf32>
    %148 = vector.extract_strided_slice %146 {offsets = [0, 64], sizes = [1, 64], strides = [1, 1]} : vector<1x256xf32> to vector<1x64xf32>
    %149 = vector.extract_strided_slice %146 {offsets = [0, 128], sizes = [1, 64], strides = [1, 1]} : vector<1x256xf32> to vector<1x64xf32>
    %150 = vector.extract_strided_slice %146 {offsets = [0, 192], sizes = [1, 64], strides = [1, 1]} : vector<1x256xf32> to vector<1x64xf32>
    %151 = arith.mulf %148, %124 : vector<1x64xf32>
    %152 = arith.mulf %147, %149 : vector<1x64xf32>
    %153 = arith.addf %151, %152 : vector<1x64xf32>
    %154 = math.tanh %153 : vector<1x64xf32>
    %155 = arith.mulf %150, %154 : vector<1x64xf32>
    %c7_i32_46 = arith.constant 7 : i32
    %156 = arith.subi %c7_i32_46, %c4_i32 : i32
    %157 = arith.index_cast %c4_i32 : i32 to index
    %c0_47 = arith.constant 0 : index
    %158 = vector.load %arg8[%157, %c0_47] : memref<8x128xf32, #tpu.memory_space<vmem>>, vector<1x64xf32>
    tpu.vector_store %arg8[%157, %c0_47], %155 {strides = array<i32>} : memref<8x128xf32, #tpu.memory_space<vmem>>, vector<1x64xf32>,
    %159 = arith.index_cast %156 : i32 to index
    %c64_48 = arith.constant 64 : index
    %160 = vector.load %arg8[%159, %c64_48] : memref<8x128xf32, #tpu.memory_space<vmem>>, vector<1x64xf32>
    tpu.vector_store %arg8[%159, %c64_48], %155 {strides = array<i32>} : memref<8x128xf32, #tpu.memory_space<vmem>>, vector<1x64xf32>,
    %c5_i32 = arith.constant 5 : i32
    %161 = arith.index_cast %c5_i32 : i32 to index
    %c0_49 = arith.constant 0 : index
    %162 = vector.load %arg7[%161, %c0_49] : memref<8x256xf32, #tpu.memory_space<vmem>>, vector<1x256xf32>
    %163 = arith.truncf %155 : vector<1x64xf32> to vector<1x64xbf16>
    %cst_50 = arith.constant dense<0.000000e+00> : vector<1x256xf32>
    %164 = tpu.matmul %163, %7, %cst_50 {dimension_numbers = #tpu.dot_dimension_numbers<[1], [0], [0], [1], [0, 0, 1, 1], [], []>} : vector<1x64xbf16>, vector<64x256xbf16>, vector<1x256xf32> -> vector<1x256xf32>
    %165 = arith.addf %162, %164 : vector<1x256xf32>
    %166 = arith.negf %165 : vector<1x256xf32>
    %167 = math.exp %166 : vector<1x256xf32>
    %cst_51 = arith.constant 1.000000e+00 : f32
    %168 = vector.broadcast %cst_51 : f32 to vector<1x256xf32>
    %169 = arith.addf %168, %167 : vector<1x256xf32>
    %170 = arith.divf %168, %169 : vector<1x256xf32>
    %cst_52 = arith.constant 2.000000e+00 : f32
    %171 = vector.broadcast %cst_52 : f32 to vector<1x256xf32>
    %172 = arith.mulf %171, %170 : vector<1x256xf32>
    %cst_53 = arith.constant 1.000000e+00 : f32
    %173 = vector.broadcast %cst_53 : f32 to vector<1x256xf32>
    %174 = arith.subf %172, %173 : vector<1x256xf32>
    %175 = arith.select %13, %174, %170 : vector<1x256xi1>, vector<1x256xf32>
    %176 = vector.extract_strided_slice %175 {offsets = [0, 0], sizes = [1, 64], strides = [1, 1]} : vector<1x256xf32> to vector<1x64xf32>
    %177 = vector.extract_strided_slice %175 {offsets = [0, 64], sizes = [1, 64], strides = [1, 1]} : vector<1x256xf32> to vector<1x64xf32>
    %178 = vector.extract_strided_slice %175 {offsets = [0, 128], sizes = [1, 64], strides = [1, 1]} : vector<1x256xf32> to vector<1x64xf32>
    %179 = vector.extract_strided_slice %175 {offsets = [0, 192], sizes = [1, 64], strides = [1, 1]} : vector<1x256xf32> to vector<1x64xf32>
    %180 = arith.mulf %177, %153 : vector<1x64xf32>
    %181 = arith.mulf %176, %178 : vector<1x64xf32>
    %182 = arith.addf %180, %181 : vector<1x64xf32>
    %183 = math.tanh %182 : vector<1x64xf32>
    %184 = arith.mulf %179, %183 : vector<1x64xf32>
    %c7_i32_54 = arith.constant 7 : i32
    %185 = arith.subi %c7_i32_54, %c5_i32 : i32
    %186 = arith.index_cast %c5_i32 : i32 to index
    %c0_55 = arith.constant 0 : index
    %187 = vector.load %arg8[%186, %c0_55] : memref<8x128xf32, #tpu.memory_space<vmem>>, vector<1x64xf32>
    tpu.vector_store %arg8[%186, %c0_55], %184 {strides = array<i32>} : memref<8x128xf32, #tpu.memory_space<vmem>>, vector<1x64xf32>,
    %188 = arith.index_cast %185 : i32 to index
    %c64_56 = arith.constant 64 : index
    %189 = vector.load %arg8[%188, %c64_56] : memref<8x128xf32, #tpu.memory_space<vmem>>, vector<1x64xf32>
    tpu.vector_store %arg8[%188, %c64_56], %184 {strides = array<i32>} : memref<8x128xf32, #tpu.memory_space<vmem>>, vector<1x64xf32>,
    %c6_i32 = arith.constant 6 : i32
    %190 = arith.index_cast %c6_i32 : i32 to index
    %c0_57 = arith.constant 0 : index
    %191 = vector.load %arg7[%190, %c0_57] : memref<8x256xf32, #tpu.memory_space<vmem>>, vector<1x256xf32>
    %192 = arith.truncf %184 : vector<1x64xf32> to vector<1x64xbf16>
    %cst_58 = arith.constant dense<0.000000e+00> : vector<1x256xf32>
    %193 = tpu.matmul %192, %7, %cst_58 {dimension_numbers = #tpu.dot_dimension_numbers<[1], [0], [0], [1], [0, 0, 1, 1], [], []>} : vector<1x64xbf16>, vector<64x256xbf16>, vector<1x256xf32> -> vector<1x256xf32>
    %194 = arith.addf %191, %193 : vector<1x256xf32>
    %195 = arith.negf %194 : vector<1x256xf32>
    %196 = math.exp %195 : vector<1x256xf32>
    %cst_59 = arith.constant 1.000000e+00 : f32
    %197 = vector.broadcast %cst_59 : f32 to vector<1x256xf32>
    %198 = arith.addf %197, %196 : vector<1x256xf32>
    %199 = arith.divf %197, %198 : vector<1x256xf32>
    %cst_60 = arith.constant 2.000000e+00 : f32
    %200 = vector.broadcast %cst_60 : f32 to vector<1x256xf32>
    %201 = arith.mulf %200, %199 : vector<1x256xf32>
    %cst_61 = arith.constant 1.000000e+00 : f32
    %202 = vector.broadcast %cst_61 : f32 to vector<1x256xf32>
    %203 = arith.subf %201, %202 : vector<1x256xf32>
    %204 = arith.select %13, %203, %199 : vector<1x256xi1>, vector<1x256xf32>
    %205 = vector.extract_strided_slice %204 {offsets = [0, 0], sizes = [1, 64], strides = [1, 1]} : vector<1x256xf32> to vector<1x64xf32>
    %206 = vector.extract_strided_slice %204 {offsets = [0, 64], sizes = [1, 64], strides = [1, 1]} : vector<1x256xf32> to vector<1x64xf32>
    %207 = vector.extract_strided_slice %204 {offsets = [0, 128], sizes = [1, 64], strides = [1, 1]} : vector<1x256xf32> to vector<1x64xf32>
    %208 = vector.extract_strided_slice %204 {offsets = [0, 192], sizes = [1, 64], strides = [1, 1]} : vector<1x256xf32> to vector<1x64xf32>
    %209 = arith.mulf %206, %182 : vector<1x64xf32>
    %210 = arith.mulf %205, %207 : vector<1x64xf32>
    %211 = arith.addf %209, %210 : vector<1x64xf32>
    %212 = math.tanh %211 : vector<1x64xf32>
    %213 = arith.mulf %208, %212 : vector<1x64xf32>
    %c7_i32_62 = arith.constant 7 : i32
    %214 = arith.subi %c7_i32_62, %c6_i32 : i32
    %215 = arith.index_cast %c6_i32 : i32 to index
    %c0_63 = arith.constant 0 : index
    %216 = vector.load %arg8[%215, %c0_63] : memref<8x128xf32, #tpu.memory_space<vmem>>, vector<1x64xf32>
    tpu.vector_store %arg8[%215, %c0_63], %213 {strides = array<i32>} : memref<8x128xf32, #tpu.memory_space<vmem>>, vector<1x64xf32>,
    %217 = arith.index_cast %214 : i32 to index
    %c64_64 = arith.constant 64 : index
    %218 = vector.load %arg8[%217, %c64_64] : memref<8x128xf32, #tpu.memory_space<vmem>>, vector<1x64xf32>
    tpu.vector_store %arg8[%217, %c64_64], %213 {strides = array<i32>} : memref<8x128xf32, #tpu.memory_space<vmem>>, vector<1x64xf32>,
    %c7_i32_65 = arith.constant 7 : i32
    %219 = arith.index_cast %c7_i32_65 : i32 to index
    %c0_66 = arith.constant 0 : index
    %220 = vector.load %arg7[%219, %c0_66] : memref<8x256xf32, #tpu.memory_space<vmem>>, vector<1x256xf32>
    %221 = arith.truncf %213 : vector<1x64xf32> to vector<1x64xbf16>
    %cst_67 = arith.constant dense<0.000000e+00> : vector<1x256xf32>
    %222 = tpu.matmul %221, %7, %cst_67 {dimension_numbers = #tpu.dot_dimension_numbers<[1], [0], [0], [1], [0, 0, 1, 1], [], []>} : vector<1x64xbf16>, vector<64x256xbf16>, vector<1x256xf32> -> vector<1x256xf32>
    %223 = arith.addf %220, %222 : vector<1x256xf32>
    %224 = arith.negf %223 : vector<1x256xf32>
    %225 = math.exp %224 : vector<1x256xf32>
    %cst_68 = arith.constant 1.000000e+00 : f32
    %226 = vector.broadcast %cst_68 : f32 to vector<1x256xf32>
    %227 = arith.addf %226, %225 : vector<1x256xf32>
    %228 = arith.divf %226, %227 : vector<1x256xf32>
    %cst_69 = arith.constant 2.000000e+00 : f32
    %229 = vector.broadcast %cst_69 : f32 to vector<1x256xf32>
    %230 = arith.mulf %229, %228 : vector<1x256xf32>
    %cst_70 = arith.constant 1.000000e+00 : f32
    %231 = vector.broadcast %cst_70 : f32 to vector<1x256xf32>
    %232 = arith.subf %230, %231 : vector<1x256xf32>
    %233 = arith.select %13, %232, %228 : vector<1x256xi1>, vector<1x256xf32>
    %234 = vector.extract_strided_slice %233 {offsets = [0, 0], sizes = [1, 64], strides = [1, 1]} : vector<1x256xf32> to vector<1x64xf32>
    %235 = vector.extract_strided_slice %233 {offsets = [0, 64], sizes = [1, 64], strides = [1, 1]} : vector<1x256xf32> to vector<1x64xf32>
    %236 = vector.extract_strided_slice %233 {offsets = [0, 128], sizes = [1, 64], strides = [1, 1]} : vector<1x256xf32> to vector<1x64xf32>
    %237 = vector.extract_strided_slice %233 {offsets = [0, 192], sizes = [1, 64], strides = [1, 1]} : vector<1x256xf32> to vector<1x64xf32>
    %238 = arith.mulf %235, %211 : vector<1x64xf32>
    %239 = arith.mulf %234, %236 : vector<1x64xf32>
    %240 = arith.addf %238, %239 : vector<1x64xf32>
    %241 = math.tanh %240 : vector<1x64xf32>
    %242 = arith.mulf %237, %241 : vector<1x64xf32>
    %c7_i32_71 = arith.constant 7 : i32
    %243 = arith.subi %c7_i32_71, %c7_i32_65 : i32
    %244 = arith.index_cast %c7_i32_65 : i32 to index
    %c0_72 = arith.constant 0 : index
    %245 = vector.load %arg8[%244, %c0_72] : memref<8x128xf32, #tpu.memory_space<vmem>>, vector<1x64xf32>
    tpu.vector_store %arg8[%244, %c0_72], %242 {strides = array<i32>} : memref<8x128xf32, #tpu.memory_space<vmem>>, vector<1x64xf32>,
    %246 = arith.index_cast %243 : i32 to index
    %c64_73 = arith.constant 64 : index
    %247 = vector.load %arg8[%246, %c64_73] : memref<8x128xf32, #tpu.memory_space<vmem>>, vector<1x64xf32>
    tpu.vector_store %arg8[%246, %c64_73], %242 {strides = array<i32>} : memref<8x128xf32, #tpu.memory_space<vmem>>, vector<1x64xf32>,
    %c8_i32 = arith.constant 8 : i32
    %c0_74 = arith.constant 0 : index
    %c0_75 = arith.constant 0 : index
    %248 = vector.load %arg8[%c0_74, %c0_75] : memref<8x128xf32, #tpu.memory_space<vmem>>, vector<8x128xf32>
    %c0_76 = arith.constant 0 : index
    %c0_77 = arith.constant 0 : index
    %249 = vector.load %arg4[%c0_76, %c0_77] : memref<128x128xf32, #tpu.memory_space<vmem>>, vector<128x128xf32>
    %cst_78 = arith.constant dense<0.000000e+00> : vector<8x128xf32>
    %250 = tpu.matmul %248, %249, %cst_78 {dimension_numbers = #tpu.dot_dimension_numbers<[1], [0], [0], [1], [0, 0, 1, 1], [], []>} : vector<8x128xf32>, vector<128x128xf32>, vector<8x128xf32> -> vector<8x128xf32>
    %c0_79 = arith.constant 0 : index
    %c0_80 = arith.constant 0 : index
    %251 = vector.load %arg5[%c0_79, %c0_80] : memref<1x128xf32, #tpu.memory_space<vmem>>, vector<1x128xf32>
    %252 = vector.broadcast %251 : vector<1x128xf32> to vector<8x128xf32>
    %253 = arith.addf %250, %252 : vector<8x128xf32>
    %cst_81 = arith.constant dense<0xFF800000> : vector<8xf32>
    %254 = vector.multi_reduction <maximumf>, %253, %cst_81 [1] : vector<8x128xf32> to vector<8xf32>
    %255 = vector.shape_cast %254 : vector<8xf32> to vector<8x1xf32>
    %256 = vector.broadcast %255 : vector<8x1xf32> to vector<8x128xf32>
    %257 = arith.subf %253, %256 : vector<8x128xf32>
    %258 = math.exp %257 : vector<8x128xf32>
    %cst_82 = arith.constant dense<0.000000e+00> : vector<8xf32>
    %259 = vector.multi_reduction <add>, %258, %cst_82 [1] : vector<8x128xf32> to vector<8xf32>
    %260 = vector.shape_cast %259 : vector<8xf32> to vector<8x1xf32>
    %261 = math.log %260 : vector<8x1xf32>
    %262 = arith.addf %255, %261 : vector<8x1xf32>
    %263 = vector.broadcast %262 : vector<8x1xf32> to vector<8x128xf32>
    %264 = arith.subf %253, %263 : vector<8x128xf32>
    %c0_83 = arith.constant 0 : index
    %c0_84 = arith.constant 0 : index
    %265 = vector.load %arg6[%c0_83, %c0_84] : memref<8x128xf32, #tpu.memory_space<vmem>>, vector<8x128xf32>
    tpu.vector_store %arg6[%c0_83, %c0_84], %264 {strides = array<i32>} : memref<8x128xf32, #tpu.memory_space<vmem>>, vector<8x128xf32>,
    return
  }
}

</mosaic_0001>

<bundles_post_ra>
// kernel: lstm_tagger_forward.1
= control target key start
LH: loop header
LB: loop body
LE: loop exit
PB: predicated region body
PF: predicated region fallthrough
CT: control target
= control target key end

     0   :  { %11 = vsyncpa [#allocation5], 0  ;;  %s1787_s0 = inlined_call_operand.vmem [shape: bf16[8,32], index: 0, kind: input, shape index: {}]   ;;  %s1788_s1 = inlined_call_operand.vmem [shape: bf16[32,256], index: 1, kind: input, shape index: {}]   ;;  %s1789_s2 = inlined_call_operand.vmem [shape: bf16[64,256], index: 2, kind: input, shape index: {}]   ;;  %s1790_s3 = inlined_call_operand.vmem [shape: f32[1,256], index: 3, kind: input, shape index: {}]   ;;  %s1791_s4 = inlined_call_operand.hbm [shape: f32[128,128], index: 4, kind: input, shape index: {}]   ;;  %s1792_s5 = inlined_call_operand.vmem [shape: f32[1,128], index: 5, kind: input, shape index: {}]   ;;  %s1793_s6 = inlined_call_operand.hbm [shape: f32[8,128], index: 6, kind: output, shape index: {}]  }
   0x1   :  { %12 = vsyncpa [#allocation6], 0  ;;  %s1439_s21 = smov [#allocation4]  }
   0x2   :  { %s26_s22 = sshll.u32 %s1439_s21, 4  ;;  %s27_s22 = int_to_ptr.vmem [resolvable:$true] %s26_s22 }
   0x3   :  { %s1403_s23 = scalar_lea.vmem %s27_s22, 2048  ;;  %p1408_p1 = scmp.lt.s32.totalorder %s27_s22, %s27_s22 }
   0x4   :  { %p1404_p0 = scmp.ne.s32.totalorder %s27_s22, %s1403_s23  ;;  %p1409_p2 = scmp.lt.s32.totalorder %s1403_s23, %s1403_s23 }
   0x6   :  { %p1410_p3 = por %p1409_p2, %p1408_p1 }
   0x8   :  { %p1411_p4 = pnand %p1410_p3, %p1404_p0 }
   0xa   :  { %1414 = shalt.err (!%p1411_p4)
}
   0xb   :  { %s1440_s24 = smov 128   ;;  %s1441_s25 = smov 8  }
   0xc   :  { %32 = dma.hbm_to_vmem [thread:$0]  %s1791_s4, 2048, %s27_s22, [#allocation5], %s1440_s24, %s1440_s24, %s1441_s25  }
   0xd   :  { %1435 = dma.done.wait [#allocation5], 2048  }
   0xe   :  { %1436 = vsyncadd [#allocation5], 4294965248  ;;  %v1442_v0 = vmov 0   ;;  %v1325_v1 = vld [vmem:[%s1788_s1 + $0x14] ss:$8 sps:$4 sm:$0xff]   ;;  %vm76_vm0 = vcmask 261120   ;;  %v46_v14 = vlaneseq }
   0xf   :  { %112 = vmatprep.mubr.bf16.mxu1 %v1442_v0  ;;  %217 = vmatprep.mubr.bf16.mxu0 %v1442_v0  ;;  %v1494_v2 = vld [vmem:[%s1789_s2 + $0x34] ss:$8 sps:$4 sm:$0xff]   ;;  %v1329_v3 = vld [vmem:[%s1788_s1 + $0x10] ss:$8 sps:$4 sm:$0xff]   ;;  %v1331_v5 = vld [vmem:[%s1788_s1 + $0x4] ss:$8 sps:$4 sm:$0xff]  }
  0x10   :  { %92 = vmatprep.subr.bf16.mxu1 %v1325_v1  ;;  %v1502_v4 = vld [vmem:[%s1789_s2 + $0x30] ss:$8 sps:$4 sm:$0xff]   ;;  %193 = vmatprep.subr.bf16.mxu0 %v1494_v2  ;;  %v1512_v6 = vld [vmem:[%s1789_s2 + $0x24] ss:$8 sps:$4 sm:$0xff]   ;;  %v1335_v7 = vld [vmem:[%s1788_s1] ss:$8 sps:$4 sm:$0xff]  }
  0x11   :  { %93 = vmatpush1.bf16.msra.mxu1 %v1329_v3  ;;  %194 = vmatpush1.bf16.msra.mxu0 %v1502_v4  ;;  %v1520_v8 = vld [vmem:[%s1789_s2 + $0x20] ss:$8 sps:$4 sm:$0xff]   ;;  %v1526_v9 = vld [vmem:[%s1789_s2 + $0x14] ss:$8 sps:$4 sm:$0xff]   ;;  %v1535_v11 = vld [vmem:[%s1789_s2 + $0x10] ss:$8 sps:$4 sm:$0xff]  }
  0x12   :  { %94 = vmatprep.subr.bf16.mxu1 %v1331_v5  ;;  %195 = vmatprep.subr.bf16.mxu0 %v1512_v6  ;;  %v39_v10 = vld [vmem:[%s1787_s0] sm:$0xf]  ;;  %v1541_v12 = vld [vmem:[%s1789_s2 + $0x4] ss:$8 sps:$4 sm:$0xff]   ;;  %v47_v15 = vshrl.u32 %v46_v14, 7  ;;  %v132_v43 = vand.u32 127, %v46_v14 }
  0x13   :  { %v1548_v13 = vld [vmem:[%s1789_s2] ss:$8 sps:$4 sm:$0xff]   ;;  %v1443_v23 = vmov 1966171168   ;;  %vm292_vm2 = vcmask 1040896   ;;  %vm181_vm3 = vcmask 523264  }
  0x14   :  { %v1572_v16 = vsub.s32 0, %v47_v15  ;;  %v44_v17 = vld [vmem:[%s1790_s3] sm:$0x3]  ;;  %v1577_v18 = vsub.s32 1, %v47_v15  ;;  %v230_v24 = vunpack.c.l.s4 %v1443_v23  ;;  %v1585_v45 = vadd.s32 128, %v132_v43  ;;  %s1444_s3 = smov 64  }
  0x15   :  { %95 = vmatpush1.bf16.msra.mxu1 %v1335_v7  ;;  %196 = vmatpush1.bf16.msra.mxu0 %v1520_v8  ;;  %vm290_vm4 = vcmask 516096   ;;  %vm1446_vm5 = vmmov 0   ;;  %s1447_s30 = smov [#allocation7]  }
  0x16   :  { %197 = vmatprep.subr.bf16.mxu0 %v1526_v9  ;;  %427 = vmatprep.subr.bf16.mxu1 %v1494_v2  ;;  %v49_v19 = vrot.slane %v44_v17, %v1572_v16  ;;  %v53_v20 = vrot.slane %v44_v17, %v1577_v18  ;;  %v231_v28 = vunpack.c.0.s8 %v230_v24  ;;  %vm137_vm1 = vcmp.lt.s32.totalorder %v1585_v45, 192  ;;  %v1118_v45 = vld [vmem:[#allocation4 + $0x58] sm:$0xff]  ;;  %s1218_s7 = sshll.u32 %s1447_s30, 4  ;;  %s1219_s7 = int_to_ptr.vmem [resolvable:$true] %s1218_s7 }
  0x17   :  { %p1420_p6 = scmp.lt.s32.totalorder %s1219_s7, %s1219_s7 }
  0x18   :  { %1231 = vmatmul.mubr.msk.bf16.vlgmr.msra.gmra.mxu1 %vm76_vm0, %v39_v10  ;;  %v1581_v31 = vsub.s32 %v231_v28, %v47_v15 }
  0x19   :  { %198 = vmatpush1.bf16.msra.mxu0 %v1535_v11  ;;  %428 = vmatpush1.bf16.msra.mxu1 %v1502_v4 }
  0x1a   :  { %199 = vmatprep.subr.bf16.mxu0 %v1541_v12  ;;  %429 = vmatprep.subr.bf16.mxu1 %v1512_v6 }
  0x1b   :  { %451 = vmatprep.mubr.bf16.mxu1 %v1442_v0 }
  0x1d   :  { %200 = vmatpush1.bf16.msra.mxu0 %v1548_v13  ;;  %430 = vmatpush1.bf16.msra.mxu1 %v1520_v8 }
  0x1e   :  { %311 = vmatprep.subr.bf16.mxu0 %v1494_v2  ;;  %431 = vmatprep.subr.bf16.mxu1 %v1526_v9 }
  0x20   :  { %218 = vmatmul.mubr.bf16.vlgmr.msra.gmra.mxu0 %v1442_v0 }
  0x21   :  { %312 = vmatpush1.bf16.msra.mxu0 %v1502_v4  ;;  %335 = vmatprep.mubr.bf16.mxu0 %v1442_v0 }
  0x22   :  { %313 = vmatprep.subr.bf16.mxu0 %v1512_v6  ;;  %432 = vmatpush1.bf16.msra.mxu1 %v1535_v11 }
  0x23   :  { %433 = vmatprep.subr.bf16.mxu1 %v1541_v12 }
  0x25   :  { %314 = vmatpush1.bf16.msra.mxu0 %v1520_v8 }
  0x26   :  { %315 = vmatprep.subr.bf16.mxu0 %v1526_v9  ;;  %434 = vmatpush1.bf16.msra.mxu1 %v1548_v13 }
  0x27   :  { %659 = vmatprep.subr.bf16.mxu1 %v1494_v2 }
  0x29   :  { %316 = vmatpush1.bf16.msra.mxu0 %v1535_v11 }
  0x2a   :  { %317 = vmatprep.subr.bf16.mxu0 %v1541_v12 }
  0x2d   :  { %318 = vmatpush1.bf16.msra.mxu0 %v1548_v13 }
  0x2e   :  { %543 = vmatprep.subr.bf16.mxu0 %v1494_v2 }
  0xd8   :  { %v114_v21 = vpop.f32.mrf.mxu1 }
  0xd9   :  { %v115_v22 = vadd.f32 %v114_v21, %v49_v19 }
  0xda   :  { %v116_v25 = vpop.f32.mrf.mxu1 }
  0xdb   :  { %121 = vst [vmem:[#allocation2] sm:$0xff] %v115_v22  ;;  %v117_v26 = vadd.f32 %v116_v25, %v53_v20 }
  0xdc   :  { %v118_v27 = vpop.f32.mrf.mxu1 }
  0xdd   :  { %122 = vst [vmem:[#allocation2 + $0x8] sm:$0xff] %v117_v26 }
  0xde   :  { %v119_v29 = vpop.f32.mrf.mxu1 }
  0xe0   :  { %v219_v30 = vpop.f32.mrf.mxu0 }
  0xe2   :  { %v221_v32 = vpop.f32.mrf.mxu0 }
  0xe3   :  { %v228_v33 = vcombine.low %v219_v30, %v221_v32 }
  0xe4   :  { %v223_v34 = vpop.f32.mrf.mxu0  ;;  %v140_v38 = vld [vmem:[#allocation2] ss:$8 sm:$0x3]  ;;  %v295_v7 = vld [vmem:[#allocation2 + $0x1] ss:$8 sm:$0x3] }
  0xe5   :  { %v235_v35 = vrot.slane %v228_v33, %v1581_v31 }
  0xe6   :  { %v224_v36 = vpop.f32.mrf.mxu0 }
  0xe7   :  { %v242_v37 = vrot.slane %v235_v35, %v1581_v31 }
  0xe9   :  { %v244_v39 = vadd.f32 %v242_v37, %v140_v38 }
  0xeb   :  { %v1240_v40 = vmul.f32 -1.442695, %v244_v39 }
  0xed   :  { %1343 = vpow2.f32 %v1240_v40 }
  0xfa   :  { %v1344_v41 = vpop.eup %1343 }
  0xfb   :  { %v248_v42 = vadd.f32 1.0, %v1344_v41 }
  0xfd   :  { %1345 = vrcp.f32 %v248_v42  ;;  %v411_v42 = vld [vmem:[#allocation2 + $0x2] ss:$8 sm:$0x3] }
 0x10a   :  { %v1346_v44 = vpop.eup %1345 }
 0x10b   :  { %v251_v46 = vmul.f32 2.0, %v1346_v44  ;;  %v272_v49 = vrot.slane %v1346_v44, %v1577_v18  ;;  %v268_v50 = vrot.slane %v1346_v44, %v1572_v16 }
 0x10d   :  { %v1241_v47 = vadd.f32 -1.0, %v251_v46  ;;  %v277_v53 = vmul.f32 0.0, %v268_v50 }
 0x10f   :  { %v261_v48 = vrot.slane %v1241_v47, %v1577_v18 }
 0x111   :  { %v276_v51 = vsel %vm137_vm1, %v261_v48, %v272_v49 }
 0x112   :  { %v278_v52 = vmul.f32 %v276_v51, %v268_v50 }
 0x114   :  { %280 = vrot.lane.b32.xlu0 %v278_v52, %s1444_s3 }
 0x186   :  { %v281_v54 = vpop.permute.xlu0 %280 }
 0x187   :  { %v283_v55 = vadd.f32 %v281_v54, %v277_v53 }
 0x189   :  { %1347 = vtanh.f32 %v283_v55 }
 0x196   :  { %v1348_v56 = vpop.eup %1347 }
 0x197   :  { %v1594_v57 = vmul.f32 %v1348_v56, %v276_v51 }
 0x199   :  { %v296_v58 = vpack.c.bf16 %v1594_v57, %v1594_v57  ;;  %293 = vst.msk [vmem:[#allocation3 + $0x7] sm:$0x1] %vm292_vm2, %v1594_v57 }
 0x19b   :  { %298 = vrot.lane.b32.xlu0 %v296_v58, %s1444_s3 }
 0x20d   :  { %v299_v59 = vpop.permute.xlu0 %298 }
 0x20e   :  { %1242 = vmatmul.mubr.msk.bf16.vlgmr.msra.gmra.mxu0 %vm181_vm3, %v299_v59 }
 0x20f   :  { %544 = vmatpush1.bf16.msra.mxu0 %v1502_v4  ;;  %567 = vmatprep.mubr.bf16.mxu0 %v1442_v0 }
 0x210   :  { %545 = vmatprep.subr.bf16.mxu0 %v1512_v6 }
 0x213   :  { %546 = vmatpush1.bf16.msra.mxu0 %v1520_v8 }
 0x214   :  { %547 = vmatprep.subr.bf16.mxu0 %v1526_v9 }
 0x217   :  { %548 = vmatpush1.bf16.msra.mxu0 %v1535_v11 }
 0x218   :  { %549 = vmatprep.subr.bf16.mxu0 %v1541_v12 }
 0x21b   :  { %550 = vmatpush1.bf16.msra.mxu0 %v1548_v13 }
 0x21c   :  { %775 = vmatprep.subr.bf16.mxu0 %v1494_v2 }
 0x2ce   :  { %v337_v60 = vpop.f32.mrf.mxu0 }
 0x2d0   :  { %v339_v61 = vpop.f32.mrf.mxu0 }
 0x2d1   :  { %v346_v62 = vcombine.low %v337_v60, %v339_v61 }
 0x2d2   :  { %v341_v63 = vpop.f32.mrf.mxu0 }
 0x2d3   :  { %v353_v1 = vrot.slane %v346_v62, %v1581_v31 }
 0x2d4   :  { %v342_v3 = vpop.f32.mrf.mxu0 }
 0x2d5   :  { %v360_v5 = vrot.slane %v353_v1, %v1581_v31 }
 0x2d7   :  { %v362_v10 = vadd.f32 %v360_v5, %v295_v7 }
 0x2d9   :  { %v1243_v14 = vmul.f32 -1.442695, %v362_v10 }
 0x2db   :  { %1349 = vpow2.f32 %v1243_v14 }
 0x2e8   :  { %v1350_v15 = vpop.eup %1349 }
 0x2e9   :  { %v366_v17 = vadd.f32 1.0, %v1350_v15 }
 0x2eb   :  { %1351 = vrcp.f32 %v366_v17  ;;  %v527_v17 = vld [vmem:[#allocation2 + $0x3] ss:$8 sm:$0x3] }
 0x2f8   :  { %v1352_v19 = vpop.eup %1351 }
 0x2f9   :  { %v369_v20 = vmul.f32 2.0, %v1352_v19  ;;  %v390_v23 = vrot.slane %v1352_v19, %v1577_v18  ;;  %v386_v24 = vrot.slane %v1352_v19, %v1572_v16 }
 0x2fb   :  { %v1244_v21 = vadd.f32 -1.0, %v369_v20  ;;  %v395_v27 = vmul.f32 %v386_v24, %v283_v55 }
 0x2fd   :  { %v379_v22 = vrot.slane %v1244_v21, %v1577_v18 }
 0x2ff   :  { %v394_v25 = vsel %vm137_vm1, %v379_v22, %v390_v23 }
 0x300   :  { %v396_v26 = vmul.f32 %v394_v25, %v386_v24 }
 0x302   :  { %398 = vrot.lane.b32.xlu1 %v396_v26, %s1444_s3 }
 0x374   :  { %v399_v28 = vpop.permute.xlu1 %398 }
 0x375   :  { %v401_v29 = vadd.f32 %v399_v28, %v395_v27 }
 0x377   :  { %1353 = vtanh.f32 %v401_v29 }
 0x384   :  { %v1354_v30 = vpop.eup %1353 }
 0x385   :  { %v1619_v32 = vmul.f32 %v1354_v30, %v394_v25 }
 0x387   :  { %v412_v33 = vpack.c.bf16 %v1619_v32, %v1619_v32  ;;  %409 = vst.msk [vmem:[#allocation3 + $0x6] sm:$0x1] %vm292_vm2, %v1619_v32 }
 0x389   :  { %414 = vrot.lane.b32.xlu1 %v412_v33, %s1444_s3 }
 0x3fb   :  { %v415_v34 = vpop.permute.xlu1 %414 }
 0x3fc   :  { %1245 = vmatmul.mubr.msk.bf16.vlgmr.msra.gmra.mxu1 %vm181_vm3, %v415_v34 }
 0x3fd   :  { %660 = vmatpush1.bf16.msra.mxu1 %v1502_v4  ;;  %683 = vmatprep.mubr.bf16.mxu1 %v1442_v0 }
 0x3fe   :  { %661 = vmatprep.subr.bf16.mxu1 %v1512_v6 }
 0x401   :  { %662 = vmatpush1.bf16.msra.mxu1 %v1520_v8 }
 0x402   :  { %663 = vmatprep.subr.bf16.mxu1 %v1526_v9 }
 0x405   :  { %664 = vmatpush1.bf16.msra.mxu1 %v1535_v11 }
 0x406   :  { %665 = vmatprep.subr.bf16.mxu1 %v1541_v12 }
 0x409   :  { %666 = vmatpush1.bf16.msra.mxu1 %v1548_v13 }
 0x40a   :  { %891 = vmatprep.subr.bf16.mxu1 %v1494_v2 }
 0x4bc   :  { %v453_v35 = vpop.f32.mrf.mxu1 }
 0x4be   :  { %v455_v36 = vpop.f32.mrf.mxu1 }
 0x4bf   :  { %v462_v37 = vcombine.low %v453_v35, %v455_v36 }
 0x4c0   :  { %v457_v38 = vpop.f32.mrf.mxu1 }
 0x4c1   :  { %v469_v39 = vrot.slane %v462_v37, %v1581_v31 }
 0x4c2   :  { %v458_v40 = vpop.f32.mrf.mxu1 }
 0x4c3   :  { %v476_v41 = vrot.slane %v469_v39, %v1581_v31 }
 0x4c5   :  { %v478_v43 = vadd.f32 %v476_v41, %v411_v42 }
 0x4c7   :  { %v1246_v44 = vmul.f32 -1.442695, %v478_v43 }
 0x4c9   :  { %1355 = vpow2.f32 %v1246_v44 }
 0x4d6   :  { %v1356_v46 = vpop.eup %1355 }
 0x4d7   :  { %v482_v47 = vadd.f32 1.0, %v1356_v46 }
 0x4d9   :  { %1357 = vrcp.f32 %v482_v47  ;;  %v643_v47 = vld [vmem:[#allocation2 + $0x4] ss:$8 sm:$0x3] }
 0x4e6   :  { %v1358_v48 = vpop.eup %1357 }
 0x4e7   :  { %v485_v49 = vmul.f32 2.0, %v1358_v48  ;;  %v506_v52 = vrot.slane %v1358_v48, %v1577_v18  ;;  %v502_v53 = vrot.slane %v1358_v48, %v1572_v16 }
 0x4e9   :  { %v1247_v50 = vadd.f32 -1.0, %v485_v49  ;;  %v511_v56 = vmul.f32 %v502_v53, %v401_v29 }
 0x4eb   :  { %v495_v51 = vrot.slane %v1247_v50, %v1577_v18 }
 0x4ed   :  { %v510_v54 = vsel %vm137_vm1, %v495_v51, %v506_v52 }
 0x4ee   :  { %v512_v55 = vmul.f32 %v510_v54, %v502_v53 }
 0x4f0   :  { %514 = vrot.lane.b32.xlu0 %v512_v55, %s1444_s3 }
 0x562   :  { %v515_v58 = vpop.permute.xlu0 %514 }
 0x563   :  { %v517_v59 = vadd.f32 %v515_v58, %v511_v56 }
 0x565   :  { %1359 = vtanh.f32 %v517_v59 }
 0x572   :  { %v1360_v60 = vpop.eup %1359 }
 0x573   :  { %v1644_v61 = vmul.f32 %v1360_v60, %v510_v54 }
 0x575   :  { %v528_v62 = vpack.c.bf16 %v1644_v61, %v1644_v61  ;;  %525 = vst.msk [vmem:[#allocation3 + $0x5] sm:$0x1] %vm292_vm2, %v1644_v61 }
 0x577   :  { %530 = vrot.lane.b32.xlu1 %v528_v62, %s1444_s3 }
 0x5e9   :  { %v531_v63 = vpop.permute.xlu1 %530 }
 0x5ea   :  { %1248 = vmatmul.mubr.msk.bf16.vlgmr.msra.gmra.mxu0 %vm181_vm3, %v531_v63 }
 0x5eb   :  { %776 = vmatpush1.bf16.msra.mxu0 %v1502_v4  ;;  %799 = vmatprep.mubr.bf16.mxu0 %v1442_v0 }
 0x5ec   :  { %777 = vmatprep.subr.bf16.mxu0 %v1512_v6 }
 0x5ef   :  { %778 = vmatpush1.bf16.msra.mxu0 %v1520_v8 }
 0x5f0   :  { %779 = vmatprep.subr.bf16.mxu0 %v1526_v9 }
 0x5f3   :  { %780 = vmatpush1.bf16.msra.mxu0 %v1535_v11 }
 0x5f4   :  { %781 = vmatprep.subr.bf16.mxu0 %v1541_v12 }
 0x5f7   :  { %782 = vmatpush1.bf16.msra.mxu0 %v1548_v13 }
 0x5f8   :  { %1007 = vmatprep.subr.bf16.mxu0 %v1494_v2 }
 0x6aa   :  { %v569_v1 = vpop.f32.mrf.mxu0 }
 0x6ac   :  { %v571_v3 = vpop.f32.mrf.mxu0 }
 0x6ad   :  { %v578_v5 = vcombine.low %v569_v1, %v571_v3 }
 0x6ae   :  { %v573_v7 = vpop.f32.mrf.mxu0 }
 0x6af   :  { %v585_v10 = vrot.slane %v578_v5, %v1581_v31 }
 0x6b0   :  { %v574_v14 = vpop.f32.mrf.mxu0 }
 0x6b1   :  { %v592_v15 = vrot.slane %v585_v10, %v1581_v31 }
 0x6b3   :  { %v594_v19 = vadd.f32 %v592_v15, %v527_v17 }
 0x6b5   :  { %v1249_v20 = vmul.f32 -1.442695, %v594_v19 }
 0x6b7   :  { %1361 = vpow2.f32 %v1249_v20 }
 0x6c4   :  { %v1362_v21 = vpop.eup %1361 }
 0x6c5   :  { %v598_v22 = vadd.f32 1.0, %v1362_v21 }
 0x6c7   :  { %1363 = vrcp.f32 %v598_v22 }
 0x6d4   :  { %v1364_v23 = vpop.eup %1363 }
 0x6d5   :  { %v601_v24 = vmul.f32 2.0, %v1364_v23  ;;  %v622_v26 = vrot.slane %v1364_v23, %v1577_v18  ;;  %v618_v27 = vrot.slane %v1364_v23, %v1572_v16 }
 0x6d7   :  { %v1250_v25 = vadd.f32 -1.0, %v601_v24  ;;  %v627_v30 = vmul.f32 %v618_v27, %v517_v59 }
 0x6d9   :  { %v611_v2 = vrot.slane %v1250_v25, %v1577_v18 }
 0x6db   :  { %v626_v28 = vsel %vm137_vm1, %v611_v2, %v622_v26 }
 0x6dc   :  { %v628_v29 = vmul.f32 %v626_v28, %v618_v27 }
 0x6de   :  { %630 = vrot.lane.b32.xlu0 %v628_v29, %s1444_s3 }
 0x750   :  { %v631_v33 = vpop.permute.xlu0 %630 }
 0x751   :  { %v633_v34 = vadd.f32 %v631_v33, %v627_v30 }
 0x753   :  { %1365 = vtanh.f32 %v633_v34 }
 0x760   :  { %v1366_v35 = vpop.eup %1365 }
 0x761   :  { %v1669_v36 = vmul.f32 %v1366_v35, %v626_v28 }
 0x763   :  { %v644_v37 = vpack.c.bf16 %v1669_v36, %v1669_v36  ;;  %641 = vst.msk [vmem:[#allocation3 + $0x4] sm:$0x1] %vm292_vm2, %v1669_v36 }
 0x765   :  { %646 = vrot.lane.b32.xlu1 %v644_v37, %s1444_s3 }
 0x7d7   :  { %v647_v38 = vpop.permute.xlu1 %646 }
 0x7d8   :  { %1251 = vmatmul.mubr.msk.bf16.vlgmr.msra.gmra.mxu1 %vm181_vm3, %v647_v38 }
 0x7d9   :  { %892 = vmatpush1.bf16.msra.mxu1 %v1502_v4  ;;  %915 = vmatprep.mubr.bf16.mxu1 %v1442_v0 }
 0x7da   :  { %893 = vmatprep.subr.bf16.mxu1 %v1512_v6 }
 0x7dd   :  { %894 = vmatpush1.bf16.msra.mxu1 %v1520_v8 }
 0x7de   :  { %895 = vmatprep.subr.bf16.mxu1 %v1526_v9 }
 0x7e1   :  { %896 = vmatpush1.bf16.msra.mxu1 %v1535_v11 }
 0x7e2   :  { %897 = vmatprep.subr.bf16.mxu1 %v1541_v12 }
 0x7e5   :  { %898 = vmatpush1.bf16.msra.mxu1 %v1548_v13 }
 0x898   :  { %v685_v39 = vpop.f32.mrf.mxu1 }
 0x89a   :  { %v687_v40 = vpop.f32.mrf.mxu1 }
 0x89b   :  { %v694_v41 = vcombine.low %v685_v39, %v687_v40 }
 0x89c   :  { %v689_v42 = vpop.f32.mrf.mxu1 }
 0x89d   :  { %v701_v43 = vrot.slane %v694_v41, %v1581_v31 }
 0x89e   :  { %v690_v44 = vpop.f32.mrf.mxu1 }
 0x89f   :  { %v708_v46 = vrot.slane %v701_v43, %v1581_v31  ;;  %v875_v44 = vld [vmem:[#allocation2 + $0x6] ss:$8 sm:$0x3] }
 0x8a1   :  { %v710_v48 = vadd.f32 %v708_v46, %v643_v47 }
 0x8a3   :  { %v1252_v49 = vmul.f32 -1.442695, %v710_v48 }
 0x8a5   :  { %1367 = vpow2.f32 %v1252_v49 }
 0x8b2   :  { %v1368_v50 = vpop.eup %1367 }
 0x8b3   :  { %v714_v51 = vadd.f32 1.0, %v1368_v50 }
 0x8b5   :  { %1369 = vrcp.f32 %v714_v51 }
 0x8c2   :  { %v1370_v52 = vpop.eup %1369 }
 0x8c3   :  { %v717_v53 = vmul.f32 2.0, %v1370_v52  ;;  %v738_v56 = vrot.slane %v1370_v52, %v1577_v18  ;;  %v734_v58 = vrot.slane %v1370_v52, %v1572_v16 }
 0x8c5   :  { %v1253_v54 = vadd.f32 -1.0, %v717_v53  ;;  %v743_v62 = vmul.f32 %v734_v58, %v633_v34 }
 0x8c7   :  { %v727_v55 = vrot.slane %v1253_v54, %v1577_v18 }
 0x8c9   :  { %v742_v59 = vsel %vm137_vm1, %v727_v55, %v738_v56 }
 0x8ca   :  { %v744_v60 = vmul.f32 %v742_v59, %v734_v58 }
 0x8cc   :  { %746 = vrot.lane.b32.xlu0 %v744_v60, %s1444_s3 }
 0x93e   :  { %v747_v63 = vpop.permute.xlu0 %746 }
 0x93f   :  { %v749_v1 = vadd.f32 %v747_v63, %v743_v62 }
 0x941   :  { %1371 = vtanh.f32 %v749_v1 }
 0x94e   :  { %v1372_v3 = vpop.eup %1371 }
 0x94f   :  { %v1693_v5 = vmul.f32 %v1372_v3, %v742_v59 }
 0x951   :  { %v760_v7 = vpack.c.bf16 %v1693_v5, %v1693_v5 }
 0x953   :  { %762 = vrot.lane.b32.xlu1 %v760_v7, %s1444_s3 }
 0x9c5   :  { %v763_v10 = vpop.permute.xlu1 %762 }
 0x9c6   :  { %1254 = vmatmul.mubr.msk.bf16.vlgmr.msra.gmra.mxu0 %vm181_vm3, %v763_v10 }
 0x9c7   :  { %1008 = vmatpush1.bf16.msra.mxu0 %v1502_v4  ;;  %1031 = vmatprep.mubr.bf16.mxu0 %v1442_v0 }
 0x9c8   :  { %1009 = vmatprep.subr.bf16.mxu0 %v1512_v6  ;;  %v759_v6 = vld [vmem:[#allocation2 + $0x5] ss:$8 sm:$0x3] }
 0x9cb   :  { %1010 = vmatpush1.bf16.msra.mxu0 %v1520_v8 }
 0x9cc   :  { %1011 = vmatprep.subr.bf16.mxu0 %v1526_v9 }
 0x9cf   :  { %1012 = vmatpush1.bf16.msra.mxu0 %v1535_v11 }
 0x9d0   :  { %1013 = vmatprep.subr.bf16.mxu0 %v1541_v12 }
 0x9d3   :  { %1014 = vmatpush1.bf16.msra.mxu0 %v1548_v13 }
 0xa86   :  { %v801_v14 = vpop.f32.mrf.mxu0 }
 0xa88   :  { %v803_v15 = vpop.f32.mrf.mxu0 }
 0xa89   :  { %v810_v17 = vcombine.low %v801_v14, %v803_v15 }
 0xa8a   :  { %v805_v19 = vpop.f32.mrf.mxu0 }
 0xa8b   :  { %v817_v4 = vrot.slane %v810_v17, %v1581_v31 }
 0xa8c   :  { %v806_v20 = vpop.f32.mrf.mxu0 }
 0xa8d   :  { %v824_v0 = vrot.slane %v817_v4, %v1581_v31 }
 0xa8f   :  { %v826_v21 = vadd.f32 %v824_v0, %v759_v6 }
 0xa91   :  { %v1255_v8 = vmul.f32 -1.442695, %v826_v21  ;;  %v991_v21 = vld [vmem:[#allocation2 + $0x7] ss:$8 sm:$0x3] }
 0xa93   :  { %1373 = vpow2.f32 %v1255_v8 }
 0xaa0   :  { %v1374_v9 = vpop.eup %1373 }
 0xaa1   :  { %v830_v22 = vadd.f32 1.0, %v1374_v9 }
 0xaa3   :  { %1375 = vrcp.f32 %v830_v22 }
 0xab0   :  { %v1376_v11 = vpop.eup %1375 }
 0xab1   :  { %v833_v12 = vmul.f32 2.0, %v1376_v11  ;;  %v854_v24 = vrot.slane %v1376_v11, %v1577_v18  ;;  %v850_v25 = vrot.slane %v1376_v11, %v1572_v16 }
 0xab3   :  { %v1256_v23 = vadd.f32 -1.0, %v833_v12  ;;  %v859_v27 = vmul.f32 %v850_v25, %v749_v1 }
 0xab5   :  { %v843_v13 = vrot.slane %v1256_v23, %v1577_v18 }
 0xab7   :  { %v858_v2 = vsel %vm137_vm1, %v843_v13, %v854_v24 }
 0xab8   :  { %v860_v26 = vmul.f32 %v858_v2, %v850_v25 }
 0xaba   :  { %862 = vrot.lane.b32.xlu0 %v860_v26, %s1444_s3 }
 0xb2c   :  { %v863_v28 = vpop.permute.xlu0 %862 }
 0xb2d   :  { %v865_v29 = vadd.f32 %v863_v28, %v859_v27  ;;  %v1122_v27 = vld [vmem:[#allocation4 + $0x78] sm:$0xff]  ;;  %v1445_v28 = vmov 0.0  }
 0xb2e   :  { %1281 = vmatprep.subr.mxu1 %v1445_v28 }
 0xb2f   :  { %1377 = vtanh.f32 %v865_v29 }
 0xb3c   :  { %v1378_v30 = vpop.eup %1377 }
 0xb3d   :  { %v1715_v33 = vmul.f32 %v1378_v30, %v858_v2  ;;  %v1116_v30 = vld [vmem:[#allocation4 + $0x48] sm:$0xff] }
 0xb3f   :  { %v876_v34 = vpack.c.bf16 %v1715_v33, %v1715_v33 }
 0xb41   :  { %878 = vrot.lane.b32.xlu1 %v876_v34, %s1444_s3  ;;  %v1114_v34 = vld [vmem:[#allocation4 + $0x38] sm:$0xff] }
 0xbb3   :  { %v879_v35 = vpop.permute.xlu1 %878 }
 0xbb4   :  { %1257 = vmatmul.mubr.msk.bf16.vlgmr.msra.gmra.mxu1 %vm181_vm3, %v879_v35  ;;  %v1113_v35 = vld [vmem:[#allocation4 + $0x30] sm:$0xff] }
 0xbb5   :  { %1282 = vmatpush3.msra.mxu1 %v1122_v27  ;;  %1313 = vmatprep.mubr.msk.f32.mxu1 %vm1446_vm5, %v1445_v28 }
 0xbb6   :  { %1283 = vmatprep.subr.mxu1 %v1445_v28 }
 0xc74   :  { %v917_v37 = vpop.f32.mrf.mxu1 }
 0xc76   :  { %v919_v38 = vpop.f32.mrf.mxu1 }
 0xc77   :  { %v926_v39 = vcombine.low %v917_v37, %v919_v38  ;;  %v1111_v37 = vld [vmem:[#allocation4 + $0x20] sm:$0xff] }
 0xc78   :  { %v921_v40 = vpop.f32.mrf.mxu1 }
 0xc79   :  { %v933_v41 = vrot.slane %v926_v39, %v1581_v31 }
 0xc7a   :  { %v922_v42 = vpop.f32.mrf.mxu1 }
 0xc7b   :  { %v940_v43 = vrot.slane %v933_v41, %v1581_v31  ;;  %v1110_v42 = vld [vmem:[#allocation4 + $0x18] sm:$0xff] }
 0xc7d   :  { %v942_v46 = vadd.f32 %v940_v43, %v875_v44  ;;  %v1109_v43 = vld [vmem:[#allocation4 + $0x10] sm:$0xff] }
 0xc7f   :  { %v1258_v47 = vmul.f32 -1.442695, %v942_v46  ;;  %v1108_v46 = vld [vmem:[#allocation4 + $0x8] sm:$0xff] }
 0xc81   :  { %1379 = vpow2.f32 %v1258_v47  ;;  %v1107_v47 = vld [vmem:[#allocation4] sm:$0xff] }
 0xc8e   :  { %v1380_v48 = vpop.eup %1379 }
 0xc8f   :  { %v946_v49 = vadd.f32 1.0, %v1380_v48 }
 0xc91   :  { %1381 = vrcp.f32 %v946_v49 }
 0xc9e   :  { %v1382_v50 = vpop.eup %1381 }
 0xc9f   :  { %v949_v51 = vmul.f32 2.0, %v1382_v50  ;;  %v970_v54 = vrot.slane %v1382_v50, %v1577_v18  ;;  %v966_v55 = vrot.slane %v1382_v50, %v1572_v16 }
 0xca1   :  { %v1259_v52 = vadd.f32 -1.0, %v949_v51  ;;  %v975_v59 = vmul.f32 %v966_v55, %v865_v29  ;;  %v1121_v29 = vld [vmem:[#allocation4 + $0x70] sm:$0xff] }
 0xca2   :  { %1284 = vmatpush3.msra.mxu1 %v1121_v29 }
 0xca3   :  { %v959_v53 = vrot.slane %v1259_v52, %v1577_v18  ;;  %1285 = vmatprep.subr.mxu1 %v1445_v28 }
 0xca5   :  { %v974_v56 = vsel %vm137_vm1, %v959_v53, %v970_v54 }
 0xca6   :  { %v976_v58 = vmul.f32 %v974_v56, %v966_v55 }
 0xca8   :  { %978 = vrot.lane.b32.xlu0 %v976_v58, %s1444_s3 }
 0xd1a   :  { %v979_v60 = vpop.permute.xlu0 %978 }
 0xd1b   :  { %v1729_v62 = vadd.f32 %v979_v60, %v975_v59 }
 0xd1d   :  { %1383 = vtanh.f32 %v1729_v62 }
 0xd2a   :  { %v1384_v63 = vpop.eup %1383 }
 0xd2b   :  { %v1732_v1 = vmul.f32 %v1384_v63, %v974_v56 }
 0xd2d   :  { %v992_v3 = vpack.c.bf16 %v1732_v1, %v1732_v1 }
 0xd2f   :  { %994 = vrot.lane.b32.xlu1 %v992_v3, %s1444_s3 }
 0xd33   :  { %287 = vrot.lane.b32.xlu1 %v1594_v57, %s1444_s3 }
 0xd37   :  { %521 = vrot.lane.b32.xlu1 %v1644_v61, %s1444_s3 }
 0xd3b   :  { %753 = vrot.lane.b32.xlu1 %v1693_v5, %s1444_s3 }
 0xd3f   :  { %985 = vrot.lane.b32.xlu1 %v1732_v1, %s1444_s3 }
 0xda1   :  { %v995_v7 = vpop.permute.xlu1 %994 }
 0xda2   :  { %1260 = vmatmul.mubr.msk.bf16.vlgmr.msra.gmra.mxu0 %vm181_vm3, %v995_v7 }
 0xda5   :  { %v288_v10 = vpop.permute.xlu1 %287 }
 0xda6   :  { %291 = vst.msk [vmem:[#allocation3] sm:$0x1] %vm290_vm4, %v288_v10 }
 0xda9   :  { %v522_v14 = vpop.permute.xlu1 %521 }
 0xdaa   :  { %524 = vst.msk [vmem:[#allocation3 + $0x2] sm:$0x1] %vm290_vm4, %v522_v14 }
 0xdab   :  { %873 = vst.msk [vmem:[#allocation3 + $0x2] sm:$0x1] %vm292_vm2, %v1715_v33 }
 0xdad   :  { %v754_v57 = vpop.permute.xlu1 %753 }
 0xdae   :  { %756 = vst.msk [vmem:[#allocation3 + $0x4] sm:$0x1] %vm290_vm4, %v754_v57 }
 0xdb1   :  { %v986_v61 = vpop.permute.xlu1 %985 }
 0xdb2   :  { %988 = vst.msk [vmem:[#allocation3 + $0x6] sm:$0x1] %vm290_vm4, %v986_v61 }
 0xe62   :  { %v1033_v15 = vpop.f32.mrf.mxu0 }
 0xe64   :  { %v1035_v17 = vpop.f32.mrf.mxu0 }
 0xe65   :  { %v1042_v19 = vcombine.low %v1033_v15, %v1035_v17 }
 0xe66   :  { %v1037_v4 = vpop.f32.mrf.mxu0 }
 0xe67   :  { %v1049_v20 = vrot.slane %v1042_v19, %v1581_v31 }
 0xe68   :  { %v1038_v0 = vpop.f32.mrf.mxu0 }
 0xe69   :  { %v1056_v6 = vrot.slane %v1049_v20, %v1581_v31 }
 0xe6b   :  { %v1058_v8 = vadd.f32 %v1056_v6, %v991_v21 }
 0xe6d   :  { %v1261_v9 = vmul.f32 -1.442695, %v1058_v8 }
 0xe6f   :  { %1385 = vpow2.f32 %v1261_v9 }
 0xe7c   :  { %v1386_v22 = vpop.eup %1385 }
 0xe7d   :  { %v1062_v11 = vadd.f32 1.0, %v1386_v22 }
 0xe7f   :  { %1387 = vrcp.f32 %v1062_v11 }
 0xe8c   :  { %v1388_v12 = vpop.eup %1387 }
 0xe8d   :  { %v1065_v23 = vmul.f32 2.0, %v1388_v12  ;;  %v1086_v25 = vrot.slane %v1388_v12, %v1577_v18  ;;  %v1082_v2 = vrot.slane %v1388_v12, %v1572_v16  ;;  %v1120_v16 = vld [vmem:[#allocation4 + $0x68] sm:$0xff] }
 0xe8e   :  { %1286 = vmatpush3.msra.mxu1 %v1120_v16 }
 0xe8f   :  { %v1262_v13 = vadd.f32 -1.0, %v1065_v23  ;;  %1287 = vmatprep.subr.mxu1 %v1445_v28  ;;  %v1091_v38 = vmul.f32 %v1082_v2, %v1729_v62 }
 0xe91   :  { %v1075_v24 = vrot.slane %v1262_v13, %v1577_v18  ;;  %v1119_v18 = vld [vmem:[#allocation4 + $0x60] sm:$0xff] }
 0xe92   :  { %1288 = vmatpush3.msra.mxu1 %v1119_v18 }
 0xe93   :  { %v1759_v26 = vsel %vm137_vm1, %v1075_v24, %v1086_v25  ;;  %1289 = vmatprep.subr.mxu1 %v1445_v28 }
 0xe94   :  { %v1092_v31 = vmul.f32 %v1759_v26, %v1082_v2  ;;  %1290 = vmatpush3.msra.mxu1 %v1118_v45 }
 0xe95   :  { %1291 = vmatprep.subr.mxu1 %v1445_v28 }
 0xe96   :  { %1094 = vrot.lane.b32.xlu0 %v1092_v31, %s1444_s3 }
 0xe9a   :  { %405 = vrot.lane.b32.xlu0 %v1619_v32, %s1444_s3  ;;  %v1117_v32 = vld [vmem:[#allocation4 + $0x50] sm:$0xff] }
 0xe9b   :  { %1292 = vmatpush3.msra.mxu1 %v1117_v32 }
 0xe9c   :  { %1293 = vmatprep.subr.mxu1 %v1445_v28 }
 0xe9d   :  { %1294 = vmatpush3.msra.mxu1 %v1116_v30 }
 0xe9e   :  { %637 = vrot.lane.b32.xlu0 %v1669_v36, %s1444_s3  ;;  %v1115_v36 = vld [vmem:[#allocation4 + $0x40] sm:$0xff]  ;;  %1295 = vmatprep.subr.mxu1 %v1445_v28 }
 0xe9f   :  { %1296 = vmatpush3.msra.mxu1 %v1115_v36 }
 0xea0   :  { %1297 = vmatprep.subr.mxu1 %v1445_v28 }
 0xea1   :  { %1298 = vmatpush3.msra.mxu1 %v1114_v34 }
 0xea2   :  { %869 = vrot.lane.b32.xlu0 %v1715_v33, %s1444_s3  ;;  %1299 = vmatprep.subr.mxu1 %v1445_v28  ;;  %v1112_v33 = vld [vmem:[#allocation4 + $0x28] sm:$0xff] }
 0xea3   :  { %1300 = vmatpush3.msra.mxu1 %v1113_v35 }
 0xea4   :  { %1301 = vmatprep.subr.mxu1 %v1445_v28 }
 0xea5   :  { %1302 = vmatpush3.msra.mxu1 %v1112_v33 }
 0xea6   :  { %1303 = vmatprep.subr.mxu1 %v1445_v28 }
 0xea7   :  { %1304 = vmatpush3.msra.mxu1 %v1111_v37 }
 0xea8   :  { %1305 = vmatprep.subr.mxu1 %v1445_v28 }
 0xea9   :  { %1306 = vmatpush3.msra.mxu1 %v1110_v42 }
 0xeaa   :  { %1307 = vmatprep.subr.mxu1 %v1445_v28 }
 0xeab   :  { %1308 = vmatpush3.msra.mxu1 %v1109_v43 }
 0xeac   :  { %1309 = vmatprep.subr.mxu1 %v1445_v28 }
 0xead   :  { %1310 = vmatpush3.msra.mxu1 %v1108_v46 }
 0xeae   :  { %1311 = vmatprep.subr.mxu1 %v1445_v28 }
 0xeaf   :  { %1312 = vmatpush3.msra.mxu1 %v1107_v47 }
 0xf08   :  { %v1095_v39 = vpop.permute.xlu0 %1094 }
 0xf09   :  { %v1097_v40 = vadd.f32 %v1095_v39, %v1091_v38 }
 0xf0b   :  { %1389 = vtanh.f32 %v1097_v40 }
 0xf0c   :  { %v406_v41 = vpop.permute.xlu0 %405 }
 0xf0d   :  { %408 = vst.msk [vmem:[#allocation3 + $0x1] sm:$0x1] %vm290_vm4, %v406_v41 }
 0xf0e   :  { %989 = vst.msk [vmem:[#allocation3 + $0x1] sm:$0x1] %vm292_vm2, %v1732_v1 }
 0xf10   :  { %v638_v44 = vpop.permute.xlu0 %637 }
 0xf11   :  { %640 = vst.msk [vmem:[#allocation3 + $0x3] sm:$0x1] %vm290_vm4, %v638_v44 }
 0xf12   :  { %757 = vst.msk [vmem:[#allocation3 + $0x3] sm:$0x1] %vm292_vm2, %v1693_v5  ;;  %v1263_v5 = vld [vmem:[%s1792_s5] ss:$0 sm:$0xff]  ;;  %s1415_s5 = scalar_lea.vmem %s1219_s7, 128 }
 0xf13   :  { %p1416_p5 = scmp.ne.s32.totalorder %s1219_s7, %s1415_s5  ;;  %p1421_p7 = scmp.lt.s32.totalorder %s1415_s5, %s1415_s5 }
 0xf14   :  { %v870_v48 = vpop.permute.xlu0 %869 }
 0xf15   :  { %872 = vst.msk [vmem:[#allocation3 + $0x5] sm:$0x1] %vm290_vm4, %v870_v48  ;;  %p1422_p8 = por %p1421_p7, %p1420_p6 }
 0xf17   :  { %p1423_p9 = pnand %p1422_p8, %p1416_p5 }
 0xf18   :  { %v1390_v49 = vpop.eup %1389 }
 0xf19   :  { %v1099_v50 = vmul.f32 %v1390_v49, %v1759_v26 }
 0xf1b   :  { %1101 = vrot.lane.b32.xlu0 %v1099_v50, %s1444_s3  ;;  %1105 = vst.msk [vmem:[#allocation3] sm:$0x1] %vm292_vm2, %v1099_v50 }
 0xf8d   :  { %v1102_v51 = vpop.permute.xlu0 %1101 }
 0xf8e   :  { %1104 = vst.msk [vmem:[#allocation3 + $0x7] sm:$0x1] %vm290_vm4, %v1102_v51 }
 0xf95   :  { %v1106_v52 = vld [vmem:[#allocation3] sm:$0xff] }
 0xf96   :  { %1314 = vmatmul.mubr.f32.vlgmr.msra.gmra.mxu1 %v1106_v52 }
0x1056   :  { %v1196_v53 = vpop.f32.mrf.mxu1 }
0x1057   :  { %v1197_v54 = vadd.f32 %v1263_v5, %v1196_v53 }
0x1058   :  { %v1315_v55 = vpop.f32.mrf.mxu1 }
0x1059   :  { %1200 = vmax.xlane.f32.xlu1 %v1197_v54 }
0x10e2   :  { %v1201_v56 = vpop.xlane.xlu1 %1200 }
0x10e3   :  { %v1202_v58 = vsub.f32 %v1197_v54, %v1201_v56 }
0x10e5   :  { %v1203_v59 = vmul.f32 1.442695, %v1202_v58 }
0x10e7   :  { %1391 = vpow2.f32 %v1203_v59 }
0x10f4   :  { %v1392_v60 = vpop.eup %1391 }
0x10f5   :  { %1205 = vadd.xlane.f32.xlu0 %v1392_v60 }
0x117e   :  { %v1206_v62 = vpop.xlane.xlu0 %1205 }
0x117f   :  { %1393 = vlog2.f32 %v1206_v62 }
0x118c   :  { %v1394_v63 = vpop.eup %1393 }
0x118d   :  { %v1208_v1 = vmul.f32 0.6931472, %v1394_v63 }
0x118f   :  { %v1209_v3 = vadd.f32 %v1208_v1, %v1201_v56 }
0x1191   :  { %v1210_v7 = vsub.f32 %v1197_v54, %v1209_v3 }
0x1193   :  { %1211 = vst [vmem:[#allocation7] sm:$0xff] %v1210_v7 }
0x1194   :  { %1426 = shalt.err (!%p1423_p9)
}
0x1195   :  { %1221 = dma.vmem_to_hbm [thread:$0]  %s1219_s7, 128, %s1793_s6, [#allocation6]  }
0x1196   :  { %1437 = dma.done.wait [#allocation6], 128  }
0x1197   :  { %1438 = vsyncadd [#allocation6], 4294967168 }
0x1198   :  { %1225 = vsyncpa [#allocation5], 1 }
0x1199   :  { %1226 = vsyncpa [#allocation6], 1 }

</bundles_post_ra>
